<compile_context>
chip_gen: v7x
topology: tpu7x:2x2x1
jax: 0.10.0
libtpu: 0.0.40
codegen_flags: <defaults>
</compile_context>

<pallas_src>
import jax
import jax.numpy as jnp
from jax.experimental import pallas as pl
from jax.experimental.pallas import tpu as pltpu

HIDDEN = 64


def actor_critic_kernel(x_ref, w1_ref, b1_ref, w2_ref, b2_ref,
                        w3_ref, b3_ref, out_ref):
    # x tile: [tb, obs] f32 -> bf16 in-kernel (VPU cast rides idle slots in a
    # DMA-bound kernel; avoids a separate wrapper-side cast pass over x).
    x = x_ref[...].astype(jnp.bfloat16)
    h1 = jnp.dot(x, w1_ref[...], preferred_element_type=jnp.float32) + b1_ref[...]
    h1 = jnp.maximum(h1, 0.0).astype(jnp.bfloat16)          # ReLU in f32, feed MXU bf16
    h2 = jnp.dot(h1, w2_ref[...], preferred_element_type=jnp.float32) + b2_ref[...]
    h2 = jnp.maximum(h2, 0.0).astype(jnp.bfloat16)
    # narrow actor-mean head -> [tb, act_size] f32 store
    out_ref[...] = (
        jnp.dot(h2, w3_ref[...], preferred_element_type=jnp.float32) + b3_ref[...]
    )


def _round_up(x, m):
    return ((x + m - 1) // m) * m


def prepare_params(params):
    """One-time parameter prep (hoisted out of the per-call path).

    Weights are stored [in, out] (transposed vs PyTorch's [out, in]); matmul
    weights are cast to bf16 once, biases stay f32.  The critic head and
    actor_logstd are unused by forward() and dropped here."""
    w1, b1, w2, b2, w3, b3, _wc, _bc, _actor_logstd = params
    return (w1.astype(jnp.bfloat16), b1,
            w2.astype(jnp.bfloat16), b2,
            w3.astype(jnp.bfloat16), b3)


def actor_critic_forward(x, kparams, tb=1024):
    """x: [B, obs_size] f32; kparams from prepare_params().
    Returns actor mean: [B, act_size] f32."""
    w1b, b1, w2b, b2, w3b, b3 = kparams
    B, obs = x.shape
    act_size = w3b.shape[1]

    # ---- batch tile selection ----------------------------------------------
    # Big tiles amortize the ~0.35us/step grid overhead (mem-bound kernel);
    # even tb=2048 keeps the double-buffered x/out tiles + intermediates well
    # under the scoped VMEM limit on v5e/v6e/v7x.  Keep the grid >= 2 steps
    # when the batch is large enough so v7x megacore has work for both TCs.
    tb = min(max(16, _round_up(tb, 16)), 2048)
    if B >= 64:
        tb = min(tb, max(16, _round_up((B + 1) // 2, 16)))
    tb = min(tb, _round_up(B, 16))
    grid = (pl.cdiv(B, tb),)   # ragged last block: OOB rows are masked on store
    # NOTE: no reduction over the batch axis inside the kernel, so unspecified
    # values read in the ragged-block padding never contaminate valid rows.

    const = lambda shape: pl.BlockSpec(shape, lambda i: (0, 0))  # VMEM-resident

    flops = 2 * B * (obs * HIDDEN + HIDDEN * HIDDEN + HIDDEN * act_size)
    bytes_accessed = (
        B * obs * 4 + B * act_size * 4                            # x in / mean out (f32)
        + (obs * HIDDEN + HIDDEN * HIDDEN + HIDDEN * act_size) * 2  # bf16 weights
        + (2 * HIDDEN + act_size) * 4                             # f32 biases
    )

    return pl.pallas_call(
        actor_critic_kernel,
        out_shape=jax.ShapeDtypeStruct((B, act_size), jnp.float32),
        grid_spec=pl.GridSpec(
            grid=grid,
            in_specs=[
                pl.BlockSpec((tb, obs), lambda i: (i, 0)),   # x: tiled over batch
                const(w1b.shape), const(b1.shape),           # weights/biases: resident
                const(w2b.shape), const(b2.shape),
                const(w3b.shape), const(b3.shape),
            ],
            out_specs=pl.BlockSpec((tb, act_size), lambda i: (i, 0)),
        ),
        compiler_params=pltpu.CompilerParams(
            dimension_semantics=("parallel",)),              # megacore on v7x
        cost_estimate=pl.CostEstimate(
            flops=flops, transcendentals=0, bytes_accessed=bytes_accessed),
    )(x, w1b, b1, w2b, b2, w3b, b3)


def init_params(key, obs_size, act_size, hidden=HIDDEN):
    """Deterministic init mimicking nn.Linear default (uniform +-1/sqrt(fan_in)).
    Weights stored as [in, out] (transposed vs PyTorch's [out, in])."""
    ks = jax.random.split(key, 8)

    def lin(kw, kb, fan_in, fan_out):
        bound = 1.0 / jnp.sqrt(fan_in)
        w = jax.random.uniform(kw, (fan_in, fan_out), jnp.float32, -bound, bound)
        b = jax.random.uniform(kb, (1, fan_out), jnp.float32, -bound, bound)
        return w, b

    w1, b1 = lin(ks[0], ks[1], obs_size, hidden)   # shared[0]
    w2, b2 = lin(ks[2], ks[3], hidden, hidden)     # shared[2]
    w3, b3 = lin(ks[4], ks[5], hidden, act_size)   # actor_mean
    wc, bc = lin(ks[6], ks[7], hidden, 1)          # critic (unused by forward)
    actor_logstd = jnp.zeros((act_size,), jnp.float32)  # nn.Parameter, unused in forward
    return (w1, b1, w2, b2, w3, b3, wc, bc, actor_logstd)


def reference_forward_bf16(x, params):
    """Pure-JAX reference using the same bf16-input / f32-accumulate scheme."""
    w1, b1, w2, b2, w3, b3, _wc, _bc, _ls = params
    bf = jnp.bfloat16
    h = jnp.dot(x.astype(bf), w1.astype(bf), preferred_element_type=jnp.float32) + b1
    h = jnp.maximum(h, 0.0)
    h = jnp.dot(h.astype(bf), w2.astype(bf), preferred_element_type=jnp.float32) + b2
    h = jnp.maximum(h, 0.0)
    return jnp.dot(h.astype(bf), w3.astype(bf), preferred_element_type=jnp.float32) + b3


def reference_forward_f32(x, params):
    """Pure-f32 reference matching the PyTorch module exactly."""
    w1, b1, w2, b2, w3, b3, _wc, _bc, _ls = params
    h = jnp.maximum(jnp.dot(x, w1) + b1, 0.0)
    h = jnp.maximum(jnp.dot(h, w2) + b2, 0.0)
    return jnp.dot(h, w3) + b3


if __name__ == "__main__":
    key = jax.random.PRNGKey(0)
    obs_size, act_size, batch = 32, 8, 72   # batch deliberately not a tile multiple

    kx, kp = jax.random.split(key)
    x = jax.random.normal(kx, (batch, obs_size), jnp.float32)
    params = init_params(kp, obs_size, act_size)
    kparams = prepare_params(params)        # one-time, hoisted out of the call path

    # small tb so the batch grid has real trip count (cdiv(72,32)=3, ragged last block)
    mean = actor_critic_forward(x, kparams, tb=32)
    mean = jax.block_until_ready(mean)

    assert mean.shape == (batch, act_size)
    # tight check vs a reference using the same bf16/f32-acc scheme
    ref_bf = reference_forward_bf16(x, params)
    assert jnp.allclose(mean, ref_bf, atol=1e-3, rtol=1e-3), "mismatch vs bf16 reference"
    # loose check vs the exact-f32 PyTorch-equivalent (documents bf16 drift)
    ref_f32 = reference_forward_f32(x, params)
    assert jnp.allclose(mean, ref_f32, atol=5e-2, rtol=5e-2), "mismatch vs f32 reference"

    print("KERNEL_OK")
</pallas_src>

<mosaic_0001>
module attributes {stable_mosaic.version = 11 : i64} {
  func.func @actor_critic_kernel(%arg0: i32, %arg1: memref<32x32xf32, #tpu.memory_space<vmem>>, %arg2: memref<32x64xbf16, #tpu.memory_space<vmem>>, %arg3: memref<1x64xf32, #tpu.memory_space<vmem>>, %arg4: memref<64x64xbf16, #tpu.memory_space<vmem>>, %arg5: memref<1x64xf32, #tpu.memory_space<vmem>>, %arg6: memref<64x8xbf16, #tpu.memory_space<vmem>>, %arg7: memref<1x8xf32, #tpu.memory_space<vmem>>, %arg8: memref<32x8xf32, #tpu.memory_space<vmem>>) attributes {dimension_semantics = [#tpu.dimension_semantics<parallel>], iteration_bounds = array<i64: 3>, scalar_prefetch = 0 : i64, scratch_operands = 0 : i64, tpu.core_type = #tpu.core_type<tc>, window_params = [{transform_indices = @transform_0, window_bounds = array<i64: 32, 32>}, {pipeline_mode = #tpu.pipeline_mode<synchronous>, transform_indices = @transform_1, window_bounds = array<i64: 32, 64>}, {pipeline_mode = #tpu.pipeline_mode<synchronous>, transform_indices = @transform_2, window_bounds = array<i64: 1, 64>}, {pipeline_mode = #tpu.pipeline_mode<synchronous>, transform_indices = @transform_3, window_bounds = array<i64: 64, 64>}, {pipeline_mode = #tpu.pipeline_mode<synchronous>, transform_indices = @transform_4, window_bounds = array<i64: 1, 64>}, {pipeline_mode = #tpu.pipeline_mode<synchronous>, transform_indices = @transform_5, window_bounds = array<i64: 64, 8>}, {pipeline_mode = #tpu.pipeline_mode<synchronous>, transform_indices = @transform_6, window_bounds = array<i64: 1, 8>}, {transform_indices = @transform_7, window_bounds = array<i64: 32, 8>}]} {
    %c0 = arith.constant 0 : index
    %c0_0 = arith.constant 0 : index
    %0 = vector.load %arg1[%c0, %c0_0] : memref<32x32xf32, #tpu.memory_space<vmem>>, vector<32x32xf32>
    %1 = arith.truncf %0 : vector<32x32xf32> to vector<32x32xbf16>
    %c0_1 = arith.constant 0 : index
    %c0_2 = arith.constant 0 : index
    %2 = vector.load %arg2[%c0_1, %c0_2] : memref<32x64xbf16, #tpu.memory_space<vmem>>, vector<32x64xbf16>
    %cst = arith.constant dense<0.000000e+00> : vector<32x64xf32>
    %3 = tpu.matmul %1, %2, %cst {dimension_numbers = #tpu.dot_dimension_numbers<[1], [0], [0], [1], [0, 0, 1, 1], [], []>} : vector<32x32xbf16>, vector<32x64xbf16>, vector<32x64xf32> -> vector<32x64xf32>
    %c0_3 = arith.constant 0 : index
    %c0_4 = arith.constant 0 : index
    %4 = vector.load %arg3[%c0_3, %c0_4] : memref<1x64xf32, #tpu.memory_space<vmem>>, vector<1x64xf32>
    %5 = vector.broadcast %4 : vector<1x64xf32> to vector<32x64xf32>
    %6 = arith.addf %3, %5 : vector<32x64xf32>
    %cst_5 = arith.constant 0.000000e+00 : f32
    %7 = vector.broadcast %cst_5 : f32 to vector<32x64xf32>
    %8 = arith.maximumf %6, %7 : vector<32x64xf32>
    %9 = arith.truncf %8 : vector<32x64xf32> to vector<32x64xbf16>
    %c0_6 = arith.constant 0 : index
    %c0_7 = arith.constant 0 : index
    %10 = vector.load %arg4[%c0_6, %c0_7] : memref<64x64xbf16, #tpu.memory_space<vmem>>, vector<64x64xbf16>
    %cst_8 = arith.constant dense<0.000000e+00> : vector<32x64xf32>
    %11 = tpu.matmul %9, %10, %cst_8 {dimension_numbers = #tpu.dot_dimension_numbers<[1], [0], [0], [1], [0, 0, 1, 1], [], []>} : vector<32x64xbf16>, vector<64x64xbf16>, vector<32x64xf32> -> vector<32x64xf32>
    %c0_9 = arith.constant 0 : index
    %c0_10 = arith.constant 0 : index
    %12 = vector.load %arg5[%c0_9, %c0_10] : memref<1x64xf32, #tpu.memory_space<vmem>>, vector<1x64xf32>
    %13 = vector.broadcast %12 : vector<1x64xf32> to vector<32x64xf32>
    %14 = arith.addf %11, %13 : vector<32x64xf32>
    %cst_11 = arith.constant 0.000000e+00 : f32
    %15 = vector.broadcast %cst_11 : f32 to vector<32x64xf32>
    %16 = arith.maximumf %14, %15 : vector<32x64xf32>
    %17 = arith.truncf %16 : vector<32x64xf32> to vector<32x64xbf16>
    %c0_12 = arith.constant 0 : index
    %c0_13 = arith.constant 0 : index
    %18 = vector.load %arg6[%c0_12, %c0_13] : memref<64x8xbf16, #tpu.memory_space<vmem>>, vector<64x8xbf16>
    %cst_14 = arith.constant dense<0.000000e+00> : vector<32x8xf32>
    %19 = tpu.matmul %17, %18, %cst_14 {dimension_numbers = #tpu.dot_dimension_numbers<[1], [0], [0], [1], [0, 0, 1, 1], [], []>} : vector<32x64xbf16>, vector<64x8xbf16>, vector<32x8xf32> -> vector<32x8xf32>
    %c0_15 = arith.constant 0 : index
    %c0_16 = arith.constant 0 : index
    %20 = vector.load %arg7[%c0_15, %c0_16] : memref<1x8xf32, #tpu.memory_space<vmem>>, vector<1x8xf32>
    %21 = vector.broadcast %20 : vector<1x8xf32> to vector<32x8xf32>
    %22 = arith.addf %19, %21 : vector<32x8xf32>
    %c0_17 = arith.constant 0 : index
    %c0_18 = arith.constant 0 : index
    %23 = vector.load %arg8[%c0_17, %c0_18] : memref<32x8xf32, #tpu.memory_space<vmem>>, vector<32x8xf32>
    tpu.vector_store %arg8[%c0_17, %c0_18], %22 {strides = array<i32>} : memref<32x8xf32, #tpu.memory_space<vmem>>, vector<32x8xf32>,
    return
  }
  func.func @transform_0(%arg0: i32) -> (i32, i32) {
    %c0_i32 = arith.constant 0 : i32
    %c0_i32_0 = arith.constant 0 : i32
    return %arg0, %c0_i32 : i32, i32
  }
  func.func @transform_1(%arg0: i32) -> (i32, i32) {
    %c0_i32 = arith.constant 0 : i32
    %c0_i32_0 = arith.constant 0 : i32
    %c0_i32_1 = arith.constant 0 : i32
    return %c0_i32, %c0_i32_0 : i32, i32
  }
  func.func @transform_2(%arg0: i32) -> (i32, i32) {
    %c0_i32 = arith.constant 0 : i32
    %c0_i32_0 = arith.constant 0 : i32
    %c0_i32_1 = arith.constant 0 : i32
    return %c0_i32, %c0_i32_0 : i32, i32
  }
  func.func @transform_3(%arg0: i32) -> (i32, i32) {
    %c0_i32 = arith.constant 0 : i32
    %c0_i32_0 = arith.constant 0 : i32
    %c0_i32_1 = arith.constant 0 : i32
    return %c0_i32, %c0_i32_0 : i32, i32
  }
  func.func @transform_4(%arg0: i32) -> (i32, i32) {
    %c0_i32 = arith.constant 0 : i32
    %c0_i32_0 = arith.constant 0 : i32
    %c0_i32_1 = arith.constant 0 : i32
    return %c0_i32, %c0_i32_0 : i32, i32
  }
  func.func @transform_5(%arg0: i32) -> (i32, i32) {
    %c0_i32 = arith.constant 0 : i32
    %c0_i32_0 = arith.constant 0 : i32
    %c0_i32_1 = arith.constant 0 : i32
    return %c0_i32, %c0_i32_0 : i32, i32
  }
  func.func @transform_6(%arg0: i32) -> (i32, i32) {
    %c0_i32 = arith.constant 0 : i32
    %c0_i32_0 = arith.constant 0 : i32
    %c0_i32_1 = arith.constant 0 : i32
    return %c0_i32, %c0_i32_0 : i32, i32
  }
  func.func @transform_7(%arg0: i32) -> (i32, i32) {
    %c0_i32 = arith.constant 0 : i32
    %c0_i32_0 = arith.constant 0 : i32
    return %arg0, %c0_i32 : i32, i32
  }
}

</mosaic_0001>

<bundles_post_ra>
// kernel: tpu_custom_call.1
= control target key start
LH: loop header
LB: loop body
LE: loop exit
PB: predicated region body
PF: predicated region fallthrough
CT: control target
= control target key end

     0   :  { %s1139_s24 = smov 0   ;;  %s1141_s25 = smov 0   ;;  %s1282_s0 = inlined_call_operand.vmem [shape: f32[72,32], index: 0, kind: input, shape index: {}]   ;;  %s1283_s1 = inlined_call_operand.vmem [shape: bf16[32,64], index: 1, kind: input, shape index: {}]   ;;  %s1284_s2 = inlined_call_operand.vmem [shape: f32[1,64], index: 2, kind: input, shape index: {}]   ;;  %s1285_s3 = inlined_call_operand.vmem [shape: bf16[64,64], index: 3, kind: input, shape index: {}]   ;;  %s1286_s4 = inlined_call_operand.vmem [shape: f32[1,64], index: 4, kind: input, shape index: {}]   ;;  %s1287_s5 = inlined_call_operand.vmem [shape: bf16[64,8], index: 5, kind: input, shape index: {}]   ;;  %s1288_s6 = inlined_call_operand.vmem [shape: f32[1,8], index: 6, kind: input, shape index: {}]   ;;  %s1289_s7 = inlined_call_operand.vmem [shape: f32[72,8], index: 7, kind: output, shape index: {}]  }
   0x1   :  { %s1143_s26 = smov 0  }
   0x2 LB: > { %s1152_s27 = sadd.s32 4294967295, %s1065_s26   ;;  %s1154_s28 = sadd.s32 1, %s1065_s26   ;;  %s1065_s26 = sphi %s1143_s26, %s1296_s26   ;;  %s1061_s25 = sphi %s1141_s25, %s1295_s25   ;;  %s1057_s24 = sphi %s1139_s24, %s1294_s24  }
   0x3   : > { %s173_s29 = ssub.s32 %s1065_s26, %s1154_s28  ;;  %s176_s30 = sadd.s32 1, %s1061_s25 }
   0x4   : > { %p174_p0 = scmp.eq.s32.totalorder %s173_s29, 0  ;;  %p186_p1 = scmp.ne.s32.totalorder %s1061_s25, %s1057_s24 }
   0x5   : > { %p187_p2 = scmp.eq.s32.totalorder %s1152_s27, 2  ;;  %p822_p3 = scmp.ge.s32.totalorder %s1065_s26, 1 }
   0x6   : > { %s1162_s8 = scalar_select %p174_p0, %s1061_s25, %s176_s30  }
   0x7   : > { %p1164_p4 = por %p187_p2, %p186_p1  ;;  %p246_p5 = scmp.lt.s32.totalorder %s1065_s26, 4 }
   0x9   : > { %p247_p6 = pnand %p822_p3, %p246_p5 }
   0xa   : > { %v1001_v0 = vld [vmem:[%s1283_s1] sm:$0xff] (!%p247_p6)   ;;  %s1172_s12 = sshll.u32 (!%p247_p6), %s1152_s27, 2  ;;  %v1002_v1 = vld [vmem:[%s1283_s1 + $0x8] sm:$0xff] (!%p247_p6)   ;;  %vm330_vm0 = vcmask (!%p247_p6), 261120   ;;  %v1005_v10 = vld [vmem:[%s1285_s3 + $0x10] sm:$0xff] (!%p247_p6)   ;;  %vm431_vm1 = vcmask (!%p247_p6), 523264  }
   0xb   : > { %250 = sbr.rel (%p247_p6) target bundleno = 737 (0x2e1), region = 48  ;;  %p286_p7 = scmp.lt.s32.totalorder (!%p247_p6), %s1172_s12, 8  ;;  %881 = vmatprep.subr.bf16.mxu0 (!%p247_p6), %v1001_v0  ;;  %v1003_v2 = vld [vmem:[%s1285_s3] sm:$0xff] (!%p247_p6)   ;;  %v1004_v3 = vld [vmem:[%s1285_s3 + $0x8] sm:$0xff] (!%p247_p6)   ;;  %v1006_v11 = vld [vmem:[%s1285_s3 + $0x18] sm:$0xff] (!%p247_p6)   ;;  %vm587_vm2 = vcmask (!%p247_p6), 64512  }
   0xc   : > { %882 = vmatpush3.bf16.msra.mxu0 (!%p247_p6), %v1001_v0  ;;  %889 = vmatprep.subr.bf16.mxu1 (!%p247_p6), %v1003_v2  ;;  %v1007_v12 = vld [vmem:[%s1287_s5] sm:$0xff] (!%p247_p6)   ;;  %v1008_v13 = vld [vmem:[%s1287_s5 + $0x8] sm:$0xff] (!%p247_p6)   ;;  %v1009_v29 = vld [vmem:[%s1287_s5 + $0x10] sm:$0xff] (!%p247_p6)   ;;  %s278_s26 = sand.u32 (!%p247_p6), 1, %s1057_s24  }
   0xd   : > { %883 = vmatprep.subr.bf16.mxu0 (!%p247_p6), %v1002_v1  ;;  %890 = vmatpush3.bf16.msra.mxu1 (!%p247_p6), %v1003_v2  ;;  %v826_v14 = vld [vmem:[%s1284_s2] ss:$0 sm:$0xff] (!%p247_p6)  ;;  %v1010_v30 = vld [vmem:[%s1287_s5 + $0x18] sm:$0xff] (!%p247_p6)   ;;  %s823_s29 = sshll.u32 (!%p247_p6), %s278_s26, 5 }
   0xe   : > { %891 = vmatprep.subr.bf16.mxu1 (!%p247_p6), %v1004_v3  ;;  %v831_v31 = vld [vmem:[%s1286_s4] ss:$0 sm:$0xff] (!%p247_p6)  ;;  %s1220_s11 = scalar_lea.vmem (!%p247_p6), [#allocation2], %s823_s29  }
   0xf   : > { %v838_v46 = vld [vmem:[%s1288_s6] ss:$0 sm:$0xff] (!%p247_p6) }
  0x10   : > { %884 = vmatpush3.bf16.msra.mxu0 (!%p247_p6), %v1002_v1 }
  0x11   : > { %892 = vmatpush3.bf16.msra.mxu1 (!%p247_p6), %v1004_v3  ;;  %901 = vmatprep.subr.bf16.mxu0 (!%p247_p6), %v1007_v12 }
  0x12   : > { %s287_s17 = scalar_select %p286_p7, %s1172_s12, 8  ;;  %893 = vmatprep.subr.bf16.mxu1 %v1005_v10 }
  0x13   : > { %s600_s24 = ssub.s32 (%p1164_p4), 9, %s1172_s12  ;;  %s862_s13 = sshll.u32 (%p1164_p4), %s1152_s27, 5 }
  0x14   : > { %s825_s20 = sshll.u32 %s287_s17, 3  ;;  %p601_p8 = scmp.lt.s32.totalorder (%p1164_p4), %s600_s24, 4 }
  0x15   : > { %s289_s23 = scalar_lea.vmem %s1282_s0, %s825_s20  ;;  %894 = vmatpush3.bf16.msra.mxu1 %v1005_v10  ;;  %s1233_s16 = scalar_lea.vmem (%p1164_p4), %s1289_s7, %s862_s13  }
  0x16   : > { %v301_v4 = vld [vmem:[%s289_s23] sm:$0xff]  ;;  %v302_v5 = vld [vmem:[%s289_s23 + $0x8] sm:$0xff]  ;;  %v303_v6 = vld [vmem:[%s289_s23 + $0x10] sm:$0xff]  ;;  %895 = vmatprep.subr.bf16.mxu1 %v1006_v11 }
  0x17   : > { %v305_v7 = vpack.c.bf16 %v302_v5, %v301_v4  ;;  %v304_v8 = vld [vmem:[%s289_s23 + $0x18] sm:$0xff] }
  0x18   : > { %v306_v9 = vpack.c.bf16 %v304_v8, %v303_v6 }
  0x19   : > { %885 = vmatprep.mubr.msk.bf16.mxu0 %vm330_vm0, %v305_v7  ;;  %896 = vmatpush3.bf16.msra.mxu1 %v1006_v11 }
  0x1a   : > { %886 = vmatmul.mubr.msk.bf16.vlgmr.msra.gmra.mrb[0].mxu0 %vm330_vm0, %v306_v9 }
  0x1b   : > { %902 = vmatpush3.bf16.msra.mxu0 %v1007_v12 }
  0x1c   : > { %903 = vmatprep.subr.bf16.mxu0 %v1008_v13 }
  0x1f   : > { %904 = vmatpush3.bf16.msra.mxu0 %v1008_v13 }
  0x20   : > { %905 = vmatprep.subr.bf16.mxu0 %v1009_v29 }
  0x23   : > { %906 = vmatpush3.bf16.msra.mxu0 %v1009_v29 }
  0x24   : > { %907 = vmatprep.subr.bf16.mxu0 %v1010_v30 }
  0x27   : > { %908 = vmatpush3.bf16.msra.mxu0 %v1010_v30 }
  0xed   : > { %v887_v15 = vpop.f32.mrb[0].mxu0 }
  0xee   : > { %v380_v16 = vadd.f32 %v887_v15, %v826_v14  ;;  %v371_v17 = vpop.f32.mrb[1].mxu0 }
  0xef   : > { %v372_v18 = vadd.f32 %v826_v14, %v371_v17  ;;  %v888_v19 = vpop.f32.mrb[2].mxu0 }
  0xf0   : > { %v383_v20 = vadd.f32 %v888_v19, %v826_v14  ;;  %v374_v21 = vpop.f32.mrb[3].mxu0  ;;  %v388_v23 = vmax.f32 %v380_v16, 0.0 }
  0xf1   : > { %v375_v22 = vadd.f32 %v826_v14, %v374_v21  ;;  %v386_v25 = vmax.f32 %v372_v18, 0.0 }
  0xf2   : > { %v389_v24 = vmax.f32 %v383_v20, 0.0 }
  0xf3   : > { %v387_v26 = vmax.f32 %v375_v22, 0.0 }
  0xf4   : > { %v391_v27 = vpack.c.bf16 %v389_v24, %v388_v23 }
  0xf5   : > { %v390_v28 = vpack.c.bf16 %v387_v26, %v386_v25 }
  0xf7   : > { %897 = vmatprep.mubr.msk.bf16.mxu1 %vm431_vm1, %v390_v28 }
  0xf8   : > { %898 = vmatmul.mubr.msk.bf16.vlgmr.msra.gmra.mrb[0].mxu1 %vm431_vm1, %v391_v27 }
 0x1cb   : > { %v899_v32 = vpop.f32.mrb[0].mxu1 }
 0x1cc   : > { %v481_v33 = vadd.f32 %v899_v32, %v831_v31  ;;  %v472_v34 = vpop.f32.mrb[1].mxu1 }
 0x1cd   : > { %v473_v35 = vadd.f32 %v831_v31, %v472_v34  ;;  %v900_v36 = vpop.f32.mrb[2].mxu1 }
 0x1ce   : > { %v484_v37 = vadd.f32 %v900_v36, %v831_v31  ;;  %v475_v38 = vpop.f32.mrb[3].mxu1  ;;  %v489_v40 = vmax.f32 %v481_v33, 0.0 }
 0x1cf   : > { %v476_v39 = vadd.f32 %v831_v31, %v475_v38  ;;  %v487_v42 = vmax.f32 %v473_v35, 0.0 }
 0x1d0   : > { %v490_v41 = vmax.f32 %v484_v37, 0.0 }
 0x1d1   : > { %v488_v43 = vmax.f32 %v476_v39, 0.0 }
 0x1d2   : > { %v492_v44 = vpack.c.bf16 %v490_v41, %v489_v40 }
 0x1d3   : > { %v491_v45 = vpack.c.bf16 %v488_v43, %v487_v42 }
 0x1d5   : > { %909 = vmatprep.mubr.msk.bf16.mxu0 %vm431_vm1, %v491_v45 }
 0x1d6   : > { %910 = vmatmul.mubr.msk.bf16.vlgmr.msra.gmra.mrb[4].mxu0 %vm431_vm1, %v492_v44 }
 0x2a9   : > { %v911_v47 = vpop.f32.mrb[4].mxu0  ;;  %598 = sbr.rel (!%p1164_p4) target bundleno = 737 (0x2e1), region = 52 }
 0x2aa   : > { %v581_v48 = vadd.f32 %v911_v47, %v838_v46  ;;  %v572_v49 = vpop.f32.mrb[5].mxu0 }
 0x2ab   : > { %v573_v50 = vadd.f32 %v838_v46, %v572_v49  ;;  %v912_v51 = vpop.f32.mrb[6].mxu0 }
 0x2ac   : > { %590 = vst.msk [vmem:[%s1220_s11 + $0x10] sm:$0xff] %vm587_vm2, %v581_v48  ;;  %v584_v52 = vadd.f32 %v912_v51, %v838_v46  ;;  %v575_v53 = vpop.f32.mrb[7].mxu0 }
 0x2ad   : > { %588 = vst.msk [vmem:[%s1220_s11] sm:$0xff] %vm587_vm2, %v573_v50  ;;  %v576_v54 = vadd.f32 %v838_v46, %v575_v53 }
 0x2ae   : > { %591 = vst.msk [vmem:[%s1220_s11 + $0x18] sm:$0xff] %vm587_vm2, %v584_v52 }
 0x2af   : > { %589 = vst.msk [vmem:[%s1220_s11 + $0x8] sm:$0xff] %vm587_vm2, %v576_v54 }
 0x2b0   : > { %s1298_s24 = smov (!%p601_p8, %s600_s24), 4 }
 0x2b1   : > { %s847_s17 = sshll.u32 %s1298_s24, 7 }
 0x2b2   : > { %p850_p9 = scmp.eq.s32.totalorder %s847_s17, 0 }
 0x2b3   : > { %s1239_s18 = sshrl.u32 (!%p850_p9), %s1298_s24, 2 }
 0x2b4   : > { %609 = sbr.rel (%p850_p9) target bundleno = 737 (0x2e1), region = 56  ;;  %p851_p10 = scmp.le.s32.totalorder (!%p850_p9), %s1239_s18, 0 }
 0x2bb   : > { %775 = sbr.rel (%p851_p10) target bundleno = 716 (0x2cc), region = 132  ;;  %s1291_s27 = smov (!%p851_p10), %s1233_s16 }
 0x2bc   : > { %s1292_s9 = smov (!%p851_p10), %s1220_s11  ;;  %s1248_s12 = smov (!%p851_p10), 0  }
 0x2bd   : > { %s1079_s19 = smov (!%p851_p10), 0  }
 0x2c2 LB: >> { %v677_v55 = vld [vmem:[%s1073_s9] sm:$0xff]  ;;  %v679_v56 = vld [vmem:[%s1073_s9 + $0x8] sm:$0xff]  ;;  %v681_v57 = vld [vmem:[%s1073_s9 + $0x10] sm:$0xff]  ;;  %s685_s20 = sadd.s32 1, %s1077_s12  ;;  %s671_s19 = sadd.s32 1, %s1081_s19   ;;  %s1081_s19 = sphi %s1079_s19, %s671_s19   ;;  %s1077_s12 = sphi %s1248_s12, %s1293_s12   ;;  %s1073_s9 = sphi %s1292_s9, %s690_s9   ;;  %s1069_s27 = sphi %s1291_s27, %s691_s27  }
 0x2c3   : >> { %678 = vst [vmem:[%s1069_s27] sm:$0xff] %v677_v55  ;;  %680 = vst [vmem:[%s1069_s27 + $0x8] sm:$0xff] %v679_v56  ;;  %v683_v58 = vld [vmem:[%s1073_s9 + $0x18] sm:$0xff]  ;;  %p686_p11 = scmp.ge.s32.totalorder %s685_s20, %s1239_s18  ;;  %p670_p12 = scmp.ge.s32.totalorder %s671_s19, %s1239_s18 }
 0x2c4   : >> { %682 = vst [vmem:[%s1069_s27 + $0x10] sm:$0xff] %v681_v57  ;;  %684 = vst [vmem:[%s1069_s27 + $0x18] sm:$0xff] %v683_v58 }
 0x2c5   : >> { %s1300_s20 = smov (%p686_p11, %s685_s20), 0  ;;  %673 = sbr.rel (!%p670_p12) target bundleno = 706 (0x2c2), region = 138 }
 0x2c6   : >> { %s852_s21 = sshll.u32 %s1300_s20, 5  ;;  %s1293_s12 = smov %s1300_s20 }
 0x2c7   : >> { %s690_s9 = scalar_lea.vmem %s1220_s11, %s852_s21 [#allocation2]   ;;  %s691_s27 = scalar_lea.vmem %s1233_s16, %s852_s21  }
 0x2cc PF: > { %s1264_s22 = sand.u32 3, %s1298_s24   ;;  %s863_s23 = sshll.u32 %s1239_s18, 5 }
 0x2cd   : > { %s696_s26 = scalar_lea.vmem %s1220_s11, %s863_s23 [#allocation2]   ;;  %s698_s29 = scalar_lea.vmem %s1233_s16, %s863_s23  }
 0x2ce   : > { %p857_p13 = scmp.le.s32.totalorder %s1264_s22, 0 }
 0x2cf   : > { %s1083_s30 = smov (!%p857_p13), %s698_s29   ;;  %s1087_s10 = smov (!%p857_p13), %s696_s26  }
 0x2d0   : > { %789 = sbr.rel (%p857_p13) target bundleno = 737 (0x2e1), region = 143  ;;  %s1091_s13 = smov (!%p857_p13), 0  }
 0x2d1   : > { %s1095_s14 = smov (!%p857_p13), 0  }
 0x2d7 LB: >> { %v708_v59 = vld [vmem:[%s1089_s10] sm:$0xff]  ;;  %s710_s24 = sadd.s32 1, %s1093_s13  ;;  %s702_s14 = sadd.s32 1, %s1097_s14   ;;  %s1097_s14 = sphi %s1095_s14, %s702_s14   ;;  %s1093_s13 = sphi %s1091_s13, %s1092_s13   ;;  %s1089_s10 = sphi %s1087_s10, %s715_s10   ;;  %s1085_s30 = sphi %s1083_s30, %s716_s30  }
 0x2d8   : >> { %709 = vst [vmem:[%s1085_s30] sm:$0xff] %v708_v59  ;;  %p711_p0 = scmp.ge.s32.totalorder %s710_s24, %s1264_s22  ;;  %p701_p1 = scmp.ge.s32.totalorder %s702_s14, %s1264_s22 }
 0x2da   : >> { %s1302_s24 = smov (%p711_p0, %s710_s24), 0  ;;  %704 = sbr.rel (!%p701_p1) target bundleno = 727 (0x2d7), region = 149 }
 0x2db   : >> { %s858_s11 = sshll.u32 %s1302_s24, 3  ;;  %s1092_s13 = smov %s1302_s24  }
 0x2dc   : >> { %s715_s10 = scalar_lea.vmem %s696_s26, %s858_s11 [#allocation2]   ;;  %s716_s30 = scalar_lea.vmem %s698_s29, %s858_s11  }
 0x2e1 PF: > { %p14_p2 = scmp.ge.s32.totalorder %s1154_s28, 5   ;;  %s1294_s24 = smov %s1061_s25 }
 0x2e2   : > { %s1295_s25 = smov %s1162_s8  ;;  %s1296_s26 = smov %s1154_s28 }
 0x2e3   :  { %16 = sbr.rel (!%p14_p2) target bundleno = 2 (0x2), region = 160 }

</bundles_post_ra>
